<compile_context>
chip_gen: v6e
topology: v6e:2x2x1
jax: 0.10.0
libtpu: 0.0.40
codegen_flags: <defaults>
</compile_context>

<pallas_src>
import re

import jax
import jax.numpy as jnp
from jax.experimental import pallas as pl
from jax.experimental.pallas import tpu as pltpu


# Lane widths (multiples of 128) tried in order; first one dividing the flat
# size wins, so no padding is needed for typical activation shapes.
_LANE_CANDIDATES = (1024, 512, 384, 256, 128)
_FALLBACK_LANES = 512


def _complex_relu_kernel(x_ref, o_ref):
    x = x_ref[...]
    o_ref[...] = jnp.maximum(x, jnp.zeros((), dtype=x.dtype))


def _tpu_generation():
    """Best-effort TPU generation number (5, 6, 7, ...) or None."""
    try:
        kind = jax.devices()[0].device_kind
    except Exception:
        return None
    m = re.search(r"v(\d+)", str(kind).lower())
    return int(m.group(1)) if m else None


def _tuning(itemsize):
    """Per-generation (bytes_per_vmem_buffer, dimension_semantics, vmem_limit)."""
    gen = _tpu_generation()
    if gen is not None and gen >= 7:
        # v7x: 2 TCs/chip with per-TC HBM paths; 64 MiB physical VMEM.
        # 8 MiB/buffer * 4 double-buffered buffers = 32 MiB; raise scoped limit.
        return 8 * 1024 * 1024, (pltpu.CORE_PARALLEL,), 48 * 1024 * 1024
    if gen == 6:
        # v6e: 32 MiB scoped-VMEM default -> 4 MiB/buffer (16 MiB total).
        return 4 * 1024 * 1024, ("parallel",), None
    # v5e / unknown: stay well under the 16 MiB scoped-VMEM default.
    return 2 * 1024 * 1024, ("parallel",), None


def complex_relu(x):
    """ComplexReLU forward. x: (..., 2) array (e.g. (N, C, H, W, 2))."""
    orig_shape = x.shape
    assert orig_shape[-1] == 2, "last dim must be the real/imag pair"

    total = x.size
    itemsize = jnp.dtype(x.dtype).itemsize
    flat = x.reshape(-1)

    # Choose a lane width that divides the flat size -> no pad / post-slice
    # HBM round trip.  NCHW*2 conv activations always hit one of these.
    lanes = None
    for cand in _LANE_CANDIDATES:
        if total % cand == 0:
            lanes = cand
            break

    pad = 0
    if lanes is None:
        # Rare fallback (flat size not a multiple of 128): pad with zeros
        # (ReLU-inert) and slice the result back.
        # TODO(synk): replace with a divisible-prefix kernel + tiny jnp tail to
        # avoid the extra copy when this path triggers.
        lanes = _FALLBACK_LANES
        pad = (-total) % lanes
        flat = jnp.pad(flat, (0, pad))

    rows = flat.size // lanes
    x2d = flat.reshape(rows, lanes)

    tile_bytes, dim_sem, vmem_limit = _tuning(itemsize)

    # Sub-32-bit dtypes pack along sublanes: keep block rows a multiple of
    # 8 * (4 / itemsize) so packed rows travel whole (bf16 -> 16, int8/fp8 -> 32).
    sublane_mult = 8 * max(1, 4 // itemsize)
    block_rows = (tile_bytes // (lanes * itemsize)) // sublane_mult * sublane_mult
    block_rows = max(sublane_mult, block_rows)
    if rows <= block_rows:
        block_rows = rows  # block == full array dims is always legal

    grid = (pl.cdiv(rows, block_rows),)

    out2d = pl.pallas_call(
        _complex_relu_kernel,
        out_shape=jax.ShapeDtypeStruct((rows, lanes), x.dtype),
        grid_spec=pl.GridSpec(
            grid=grid,
            in_specs=[pl.BlockSpec((block_rows, lanes), lambda i: (i, 0))],
            out_specs=pl.BlockSpec((block_rows, lanes), lambda i: (i, 0)),
        ),
        # Elementwise op: run in place on the 2-D view (no extra HBM output
        # allocation when the input is dead after this op under jit).
        input_output_aliases={0: 0},
        compiler_params=pltpu.CompilerParams(
            dimension_semantics=dim_sem,
            vmem_limit_bytes=vmem_limit,
        ),
        cost_estimate=pl.CostEstimate(
            flops=flat.size,
            transcendentals=0,
            bytes_accessed=2 * flat.size * itemsize,
        ),
    )(x2d)

    out_flat = out2d.reshape(-1)
    if pad:
        out_flat = out_flat[:total]
    return out_flat.reshape(orig_shape)


if __name__ == "__main__":
    key = jax.random.PRNGKey(0)
    # Small shape consistent with the module: NCHW + trailing complex dim.
    x = jax.random.normal(key, (2, 4, 16, 16, 2), dtype=jnp.float32)

    # Reference (pure JAX, mirrors the PyTorch forward) computed first.
    ref_real = jnp.maximum(x[..., 0], 0.0)
    ref_imag = jnp.maximum(x[..., 1], 0.0)
    ref = jnp.stack((ref_real, ref_imag), axis=-1)

    out = complex_relu(x)
    out = jax.block_until_ready(out)

    assert out.shape == x.shape
    assert out.dtype == x.dtype
    assert jnp.allclose(out, ref), "mismatch vs reference"

    print("KERNEL_OK")
</pallas_src>

<mosaic_0001>
module attributes {stable_mosaic.version = 11 : i64} {
  func.func @_complex_relu_kernel(%arg0: i32, %arg1: memref<4x1024xf32, #tpu.memory_space<vmem>>, %arg2: memref<4x1024xf32, #tpu.memory_space<vmem>>) attributes {dimension_semantics = [#tpu.dimension_semantics<parallel>], iteration_bounds = array<i64: 1>, scalar_prefetch = 0 : i64, scratch_operands = 0 : i64, tpu.core_type = #tpu.core_type<tc>, window_params = [{transform_indices = @transform_0, window_bounds = array<i64: 4, 1024>}, {transform_indices = @transform_1, window_bounds = array<i64: 4, 1024>}]} {
    %c0 = arith.constant 0 : index
    %c0_0 = arith.constant 0 : index
    %0 = vector.load %arg1[%c0, %c0_0] : memref<4x1024xf32, #tpu.memory_space<vmem>>, vector<4x1024xf32>
    %cst = arith.constant 0.000000e+00 : f32
    %1 = vector.broadcast %cst : f32 to vector<4x1024xf32>
    %2 = arith.maximumf %0, %1 : vector<4x1024xf32>
    %c0_1 = arith.constant 0 : index
    %c0_2 = arith.constant 0 : index
    %3 = vector.load %arg2[%c0_1, %c0_2] : memref<4x1024xf32, #tpu.memory_space<vmem>>, vector<4x1024xf32>
    tpu.vector_store %arg2[%c0_1, %c0_2], %2 {strides = array<i32>} : memref<4x1024xf32, #tpu.memory_space<vmem>>, vector<4x1024xf32>,
    return
  }
  func.func @transform_0(%arg0: i32) -> (i32, i32) {
    %c0_i32 = arith.constant 0 : i32
    %c0_i32_0 = arith.constant 0 : i32
    return %arg0, %c0_i32 : i32, i32
  }
  func.func @transform_1(%arg0: i32) -> (i32, i32) {
    %c0_i32 = arith.constant 0 : i32
    %c0_i32_0 = arith.constant 0 : i32
    return %arg0, %c0_i32 : i32, i32
  }
}

</mosaic_0001>

<bundles_post_ra>
// kernel: tpu_custom_call.1
= control target key start
LH: loop header
LB: loop body
LE: loop exit
PB: predicated region body
PF: predicated region fallthrough
CT: control target
= control target key end

     0   :  { %6 = vsyncpa [#allocation3], 0  ;;  %s112_s0 = inlined_call_operand.hbm [shape: f32[4,1024], index: 0, kind: input, shape index: {}, may-alias: {0,1}]   ;;  %s113_s1 = inlined_call_operand.hbm [shape: f32[4,1024], index: 1, kind: output, shape index: {}, may-alias: {0,1}]  }
   0x1   :  { %7 = vsyncpa [#allocation4], 0  ;;  %s94_s6 = smov [#allocation2]  }
   0x2   :  { %s14_s7 = sshll.u32 %s94_s6, 4  ;;  %s15_s7 = int_to_ptr.vmem [resolvable:$true] %s14_s7 }
   0x3   :  { %s58_s8 = scalar_lea.vmem %s15_s7, 512  ;;  %p63_p1 = scmp.lt.s32.totalorder %s15_s7, %s15_s7 }
   0x4   :  { %p59_p0 = scmp.ne.s32.totalorder %s15_s7, %s58_s8  ;;  %p64_p2 = scmp.lt.s32.totalorder %s58_s8, %s58_s8 }
   0x6   :  { %p65_p3 = por %p64_p2, %p63_p1 }
   0x8   :  { %p66_p4 = pnand %p65_p3, %p59_p0 }
   0xa   :  { %69 = shalt.err (!%p66_p4)
}
   0xb   :  { %17 = dma.hbm_to_vmem [thread:$0]  %s112_s0, 512, %s15_s7, [#allocation3]  }
   0xc   :  { %90 = dma.done.wait [#allocation3], 512  }
   0xd   :  { %91 = vsyncadd [#allocation3], 4294966784  ;;  %s95_s11 = smov [#allocation5]   ;;  %v21_v0 = vld [vmem:[#allocation2] sm:$0xff]  ;;  %v22_v1 = vld [vmem:[#allocation2 + $0x8] sm:$0xff] }
   0xe   :  { %s39_s12 = sshll.u32 %s95_s11, 4  ;;  %v23_v2 = vld [vmem:[#allocation2 + $0x10] sm:$0xff]  ;;  %v25_v3 = vmax.f32 %v21_v0, 0.0  ;;  %v26_v4 = vmax.f32 %v22_v1, 0.0  ;;  %v24_v6 = vld [vmem:[#allocation2 + $0x18] sm:$0xff]  ;;  %s40_s12 = int_to_ptr.vmem [resolvable:$true] %s39_s12 }
   0xf   :  { %v27_v5 = vmax.f32 %v23_v2, 0.0  ;;  %v28_v7 = vmax.f32 %v24_v6, 0.0  ;;  %s70_s13 = scalar_lea.vmem %s40_s12, 512  ;;  %p75_p6 = scmp.lt.s32.totalorder %s40_s12, %s40_s12 }
  0x10   :  { %29 = vst [vmem:[#allocation5] sm:$0xff] %v25_v3  ;;  %30 = vst [vmem:[#allocation5 + $0x8] sm:$0xff] %v26_v4  ;;  %p71_p5 = scmp.ne.s32.totalorder %s40_s12, %s70_s13  ;;  %p76_p7 = scmp.lt.s32.totalorder %s70_s13, %s70_s13 }
  0x11   :  { %31 = vst [vmem:[#allocation5 + $0x10] sm:$0xff] %v27_v5  ;;  %32 = vst [vmem:[#allocation5 + $0x18] sm:$0xff] %v28_v7 }
  0x12   :  { %p77_p8 = por %p76_p7, %p75_p6 }
  0x14   :  { %p78_p9 = pnand %p77_p8, %p71_p5 }
  0x16   :  { %81 = shalt.err (!%p78_p9)
}
  0x17   :  { %42 = dma.vmem_to_hbm [thread:$0]  %s40_s12, 512, %s113_s1, [#allocation4]  }
  0x18   :  { %92 = dma.done.wait [#allocation4], 512  }
  0x19   :  { %93 = vsyncadd [#allocation4], 4294966784 }
  0x1a   :  { %46 = vsyncpa [#allocation3], 1 }
  0x1b   :  { %47 = vsyncpa [#allocation4], 1 }

</bundles_post_ra>
